<compile_context>
chip_gen: v7x
topology: tpu7x:2x2x1
jax: 0.10.0
libtpu: 0.0.40
codegen_flags: <defaults>
</compile_context>

<pallas_src>
import math

import jax
import jax.numpy as jnp
from jax.experimental import pallas as pl
from jax.experimental.pallas import tpu as pltpu

EPS = 1e-5


def _adain_kernel(x_ref, s_ref, b_ref, o_ref):
    # x_ref: (Rt, HW)  rows = (sample, channel) pairs, lanes = flattened spatial
    # s_ref / b_ref: (Rt, 1)  per-row style scale / bias
    x = x_ref[...].astype(jnp.float32)                       # (Rt, HW)

    # InstanceNorm2d (affine=False): biased variance, eps=1e-5.
    # Single pass over the tile: var = E[x^2] - mean^2 (clamped for rounding).
    mean = jnp.mean(x, axis=-1, keepdims=True)                # (Rt, 1)
    var = jnp.mean(x * x, axis=-1, keepdims=True) - mean * mean
    var = jnp.maximum(var, 0.0)
    inv = jax.lax.rsqrt(var + EPS)                            # (Rt, 1)

    s = s_ref[...].astype(jnp.float32)                        # (Rt, 1)
    b = b_ref[...].astype(jnp.float32)                        # (Rt, 1)

    o_ref[...] = ((x - mean) * (inv * s) + b).astype(o_ref.dtype)


def adain(x, w, ws_weight, ws_bias, wb_weight, wb_bias, *, tile_bytes=2 << 20):
    """x: (N, C, H, W); w: (N, w_dim).
    ws_weight / wb_weight: (C, w_dim) as in nn.Linear; biases: (C,)."""
    N, C, H, W = x.shape
    w_dim = w.shape[1]
    HW = H * W
    scale = math.sqrt(2.0 / w_dim)

    # --- hoisted WsLinear style projections (one batched MXU matmul each) ---
    wv = (w * scale).astype(jnp.float32)
    s = wv @ ws_weight.T.astype(jnp.float32) + ws_bias.astype(jnp.float32)  # (N, C)
    b = wv @ wb_weight.T.astype(jnp.float32) + wb_bias.astype(jnp.float32)  # (N, C)

    # --- flatten to (rows, spatial); rows = (sample, channel) pairs ---
    R = N * C
    x_rows = x.reshape(R, HW)
    s_rows = s.reshape(R, 1).astype(x.dtype)
    b_rows = b.reshape(R, 1).astype(x.dtype)

    # Row tile: multiple of 8 sublanes, sized so one f32 buffer <= tile_bytes.
    # (2 input + 2 output double-buffers then stay well under the default
    #  scoped VMEM on every generation, incl. v5e's 16 MiB and v7x's 64 MiB.)
    max_rows = max(8, ((tile_bytes // (HW * 4)) // 8) * 8)
    r_pad8 = ((R + 7) // 8) * 8
    Rt = min(max_rows, r_pad8)

    # Pad rows so the grid divides evenly (padded rows are discarded at the end).
    Rp = ((R + Rt - 1) // Rt) * Rt
    if Rp != R:
        pad = Rp - R
        x_rows = jnp.pad(x_rows, ((0, pad), (0, 0)))
        s_rows = jnp.pad(s_rows, ((0, pad), (0, 0)))
        b_rows = jnp.pad(b_rows, ((0, pad), (0, 0)))

    # NOTE: HW is a multiple of 128 for typical StyleGAN resolutions; for odd
    # spatial sizes the block still equals the full lane extent (allowed), just
    # with masked stores.
    # TODO(synk): pad HW to a multiple of 128 for full-width stores on odd spatial sizes.
    grid = (Rp // Rt,)

    out_rows = pl.pallas_call(
        _adain_kernel,
        out_shape=jax.ShapeDtypeStruct((Rp, HW), x.dtype),
        grid_spec=pltpu.PrefetchScalarGridSpec(
            num_scalar_prefetch=0,
            grid=grid,
            in_specs=[
                pl.BlockSpec((Rt, HW), lambda r: (r, 0)),   # x row tile
                pl.BlockSpec((Rt, 1), lambda r: (r, 0)),    # style scale per row
                pl.BlockSpec((Rt, 1), lambda r: (r, 0)),    # style bias per row
            ],
            out_specs=pl.BlockSpec((Rt, HW), lambda r: (r, 0)),
        ),
        compiler_params=pltpu.CompilerParams(
            dimension_semantics=("parallel",)),
    )(x_rows, s_rows, b_rows)

    return out_rows[:R].reshape(N, C, H, W)


def adain_reference(x, w, ws_weight, ws_bias, wb_weight, wb_bias):
    """Pure-JAX reference matching the PyTorch module."""
    w_dim = w.shape[1]
    scale = math.sqrt(2.0 / w_dim)
    mean = jnp.mean(x, axis=(2, 3), keepdims=True)
    var = jnp.mean((x - mean) ** 2, axis=(2, 3), keepdims=True)
    x_norm = (x - mean) / jnp.sqrt(var + EPS)
    s = (w * scale) @ ws_weight.T + ws_bias
    b = (w * scale) @ wb_weight.T + wb_bias
    return x_norm * s[:, :, None, None] + b[:, :, None, None]


if __name__ == "__main__":
    N, C, H, W = 2, 4, 16, 16
    W_DIM = 8

    key = jax.random.PRNGKey(0)
    kx, kw, ks, kb = jax.random.split(key, 4)

    x = jax.random.normal(kx, (N, C, H, W), dtype=jnp.float32)
    w = jax.random.normal(kw, (N, W_DIM), dtype=jnp.float32)

    # Deterministic parameter init mirroring the module's __init__:
    # nn.init.normal_ on weights, zeros on (moved-out) biases.
    ws_weight = jax.random.normal(ks, (C, W_DIM), dtype=jnp.float32)
    ws_bias = jnp.zeros((C,), dtype=jnp.float32)
    wb_weight = jax.random.normal(kb, (C, W_DIM), dtype=jnp.float32)
    wb_bias = jnp.zeros((C,), dtype=jnp.float32)

    out = adain(x, w, ws_weight, ws_bias, wb_weight, wb_bias)
    out = jax.block_until_ready(out)

    ref = adain_reference(x, w, ws_weight, ws_bias, wb_weight, wb_bias)
    assert jnp.allclose(out, ref, atol=1e-4, rtol=1e-4), "mismatch vs reference"

    print("KERNEL_OK")
</pallas_src>

<mosaic_0001>
module attributes {stable_mosaic.version = 11 : i64} {
  func.func @_adain_kernel(%arg0: i32, %arg1: memref<8x256xf32, #tpu.memory_space<vmem>>, %arg2: memref<8x1xf32, #tpu.memory_space<vmem>>, %arg3: memref<8x1xf32, #tpu.memory_space<vmem>>, %arg4: memref<8x256xf32, #tpu.memory_space<vmem>>) attributes {dimension_semantics = [#tpu.dimension_semantics<parallel>], iteration_bounds = array<i64: 1>, scalar_prefetch = 0 : i64, scratch_operands = 0 : i64, tpu.core_type = #tpu.core_type<tc>, window_params = [{transform_indices = @transform_0, window_bounds = array<i64: 8, 256>}, {transform_indices = @transform_1, window_bounds = array<i64: 8, 1>}, {transform_indices = @transform_2, window_bounds = array<i64: 8, 1>}, {transform_indices = @transform_3, window_bounds = array<i64: 8, 256>}]} {
    %c0 = arith.constant 0 : index
    %c0_0 = arith.constant 0 : index
    %0 = vector.load %arg1[%c0, %c0_0] : memref<8x256xf32, #tpu.memory_space<vmem>>, vector<8x256xf32>
    %cst = arith.constant dense<0.000000e+00> : vector<8xf32>
    %1 = vector.multi_reduction <add>, %0, %cst [1] : vector<8x256xf32> to vector<8xf32>
    %2 = vector.shape_cast %1 : vector<8xf32> to vector<8x1xf32>
    %cst_1 = arith.constant 2.560000e+02 : f32
    %3 = vector.broadcast %cst_1 : f32 to vector<8x1xf32>
    %4 = arith.divf %2, %3 : vector<8x1xf32>
    %5 = arith.mulf %0, %0 : vector<8x256xf32>
    %cst_2 = arith.constant dense<0.000000e+00> : vector<8xf32>
    %6 = vector.multi_reduction <add>, %5, %cst_2 [1] : vector<8x256xf32> to vector<8xf32>
    %7 = vector.shape_cast %6 : vector<8xf32> to vector<8x1xf32>
    %cst_3 = arith.constant 2.560000e+02 : f32
    %8 = vector.broadcast %cst_3 : f32 to vector<8x1xf32>
    %9 = arith.divf %7, %8 : vector<8x1xf32>
    %10 = arith.mulf %4, %4 : vector<8x1xf32>
    %11 = arith.subf %9, %10 : vector<8x1xf32>
    %cst_4 = arith.constant 0.000000e+00 : f32
    %12 = vector.broadcast %cst_4 : f32 to vector<8x1xf32>
    %13 = arith.maximumf %11, %12 : vector<8x1xf32>
    %cst_5 = arith.constant 9.99999974E-6 : f32
    %14 = vector.broadcast %cst_5 : f32 to vector<8x1xf32>
    %15 = arith.addf %13, %14 : vector<8x1xf32>
    %16 = math.rsqrt %15 : vector<8x1xf32>
    %c0_6 = arith.constant 0 : index
    %c0_7 = arith.constant 0 : index
    %17 = vector.load %arg2[%c0_6, %c0_7] : memref<8x1xf32, #tpu.memory_space<vmem>>, vector<8x1xf32>
    %c0_8 = arith.constant 0 : index
    %c0_9 = arith.constant 0 : index
    %18 = vector.load %arg3[%c0_8, %c0_9] : memref<8x1xf32, #tpu.memory_space<vmem>>, vector<8x1xf32>
    %19 = vector.broadcast %4 : vector<8x1xf32> to vector<8x256xf32>
    %20 = arith.subf %0, %19 : vector<8x256xf32>
    %21 = arith.mulf %16, %17 : vector<8x1xf32>
    %22 = vector.broadcast %21 : vector<8x1xf32> to vector<8x256xf32>
    %23 = arith.mulf %20, %22 : vector<8x256xf32>
    %24 = vector.broadcast %18 : vector<8x1xf32> to vector<8x256xf32>
    %25 = arith.addf %23, %24 : vector<8x256xf32>
    %c0_10 = arith.constant 0 : index
    %c0_11 = arith.constant 0 : index
    %26 = vector.load %arg4[%c0_10, %c0_11] : memref<8x256xf32, #tpu.memory_space<vmem>>, vector<8x256xf32>
    tpu.vector_store %arg4[%c0_10, %c0_11], %25 {strides = array<i32>} : memref<8x256xf32, #tpu.memory_space<vmem>>, vector<8x256xf32>,
    return
  }
  func.func @transform_0(%arg0: i32) -> (i32, i32) {
    %c0_i32 = arith.constant 0 : i32
    %c0_i32_0 = arith.constant 0 : i32
    return %arg0, %c0_i32 : i32, i32
  }
  func.func @transform_1(%arg0: i32) -> (i32, i32) {
    %c0_i32 = arith.constant 0 : i32
    %c0_i32_0 = arith.constant 0 : i32
    return %arg0, %c0_i32 : i32, i32
  }
  func.func @transform_2(%arg0: i32) -> (i32, i32) {
    %c0_i32 = arith.constant 0 : i32
    %c0_i32_0 = arith.constant 0 : i32
    return %arg0, %c0_i32 : i32, i32
  }
  func.func @transform_3(%arg0: i32) -> (i32, i32) {
    %c0_i32 = arith.constant 0 : i32
    %c0_i32_0 = arith.constant 0 : i32
    return %arg0, %c0_i32 : i32, i32
  }
}

</mosaic_0001>

<bundles_post_ra>
// kernel: tpu_custom_call.1
= control target key start
LH: loop header
LB: loop body
LE: loop exit
PB: predicated region body
PF: predicated region fallthrough
CT: control target
= control target key end

     0   :  { %s144_s0 = inlined_call_operand.vmem [shape: f32[8,256], index: 0, kind: input, shape index: {}]   ;;  %s145_s1 = inlined_call_operand.vmem [shape: f32[8,1], index: 1, kind: input, shape index: {}]   ;;  %s146_s2 = inlined_call_operand.vmem [shape: f32[8,1], index: 2, kind: input, shape index: {}]   ;;  %s147_s3 = inlined_call_operand.hbm [shape: f32[8,256], index: 3, kind: output, shape index: {}]  }
   0x1   :  { %v15_v0 = vld [vmem:[%s144_s0] sm:$0xff]  ;;  %v16_v1 = vld [vmem:[%s144_s0 + $0x8] sm:$0xff] }
   0x2   :  { %8 = vsyncpa [#allocation3], 0  ;;  %v17_v2 = vadd.f32 %v16_v1, %v15_v0  ;;  %v22_v3 = vmul.f32 %v15_v0, %v15_v0  ;;  %v23_v4 = vmul.f32 %v16_v1, %v16_v1  ;;  %v98_v6 = vmov 0   ;;  %v33_v15 = vld [vmem:[%s145_s1] sm:$0xff]  ;;  %s99_s19 = smov [#allocation2]  }
   0x3   :  { %70 = vset.pattern.permute.xlu1 %v98_v6  ;;  %71 = vset.pattern.permute.xlu0 %v98_v6  ;;  %v34_v18 = vld [vmem:[%s146_s2] sm:$0xff]  ;;  %s60_s20 = sshll.u32 %s99_s19, 4  ;;  %s61_s20 = int_to_ptr.vmem [resolvable:$true] %s60_s20 }
   0x4   :  { %18 = vadd.xlane.f32.xlu0 %v17_v2  ;;  %v24_v5 = vadd.f32 %v23_v4, %v22_v3  ;;  %s74_s1 = scalar_lea.vmem %s61_s20, 256  ;;  %p79_p1 = scmp.lt.s32.totalorder %s61_s20, %s61_s20 }
   0x5   :  { %p75_p0 = scmp.ne.s32.totalorder %s61_s20, %s74_s1  ;;  %p80_p2 = scmp.lt.s32.totalorder %s74_s1, %s74_s1 }
   0x7   :  { %p81_p3 = por %p80_p2, %p79_p1 }
   0x8   :  { %25 = vadd.xlane.f32.xlu0 %v24_v5 }
   0x9   :  { %p82_p4 = pnand %p81_p3, %p75_p0 }
  0x91   :  { %v19_v7 = vpop.xlane.xlu0 %18 }
  0x92   :  { %v21_v8 = vmul.f32 0.00390625, %v19_v7 }
  0x94   :  { %v28_v10 = vmul.f32 %v21_v8, %v21_v8  ;;  %v35_v20 = vsub.f32 %v15_v0, %v21_v8  ;;  %v36_v21 = vsub.f32 %v16_v1, %v21_v8 }
  0x95   :  { %v26_v9 = vpop.xlane.xlu0 %25 }
  0x96   :  { %v27_v11 = vmul.f32 0.00390625, %v26_v9 }
  0x98   :  { %v29_v12 = vsub.f32 %v27_v11, %v28_v10 }
  0x9a   :  { %v30_v13 = vmax.f32 %v29_v12, 0.0 }
  0x9c   :  { %v31_v14 = vadd.f32 1e-05, %v30_v13 }
  0x9e   :  { %72 = vrsqrt.f32 %v31_v14 }
  0xa8   :  { %v73_v16 = vpop.eup %72 }
  0xa9   :  { %v37_v17 = vmul.f32 %v73_v16, %v33_v15 }
  0xab   :  { %40 = vperm.xlu1 %70, %v37_v17  }
  0xaf   :  { %47 = vperm.xlu1 %70, %v34_v18  }
 0x12a   :  { %v41_v19 = vpop.permute.xlu1 %40 }
 0x12b   :  { %v43_v22 = vmul.f32 %v41_v19, %v35_v20  ;;  %v44_v23 = vmul.f32 %v41_v19, %v36_v21 }
 0x12e   :  { %v48_v24 = vpop.permute.xlu1 %47 }
 0x12f   :  { %v50_v25 = vadd.f32 %v48_v24, %v43_v22  ;;  %v51_v26 = vadd.f32 %v48_v24, %v44_v23 }
 0x131   :  { %52 = vst [vmem:[#allocation2] sm:$0xff] %v50_v25  ;;  %53 = vst [vmem:[#allocation2 + $0x8] sm:$0xff] %v51_v26 }
 0x132   :  { %85 = shalt.err (!%p82_p4)
}
 0x133   :  { %s86_s22 = scalar_lea.hbm %s147_s3, 256 }
 0x134   :  { %p87_p5 = scmp.ne.s32.totalorder %s147_s3, %s86_s22  ;;  %p90_p6 = scmp.lt.u32.totalorder %s86_s22, %s147_s3 }
 0x136   :  { %p92_p7 = pnand %p90_p6, %p87_p5 }
 0x138   :  { %95 = shalt.err (!%p92_p7)
}
 0x139   :  { %63 = dma.vmem_to_hbm [thread:$0]  %s61_s20, 256, %s147_s3, [#allocation3]  }
 0x13a   :  { %96 = dma.done.wait [#allocation3], 256  }
 0x13b   :  { %97 = vsyncadd [#allocation3], 4294967040 }
 0x13c   :  { %67 = vsyncpa [#allocation3], 1 }

</bundles_post_ra>
